<compile_context>
chip_gen: v7x
topology: tpu7x:2x2x1
jax: 0.10.0
libtpu: 0.0.40
codegen_flags: <defaults>
</compile_context>

<pallas_src>
import functools

import numpy as np
import jax
import jax.numpy as jnp
from jax.experimental import pallas as pl
from jax.experimental.pallas import tpu as pltpu


def _quad_roi_kernel(idx_ref, rowblk_ref, valid_ref, box_ref, basis_ref, img_ref,
                     out_ref, *, group_size, img_w, crop_h, tile_p, use_bf16):
    """One grid step == one group of `group_size` boxes x one P-tile of ROI pixels.

    idx_ref    : SMEM prefetch (num_groups,) i32  group -> image index (index_map only)
    rowblk_ref : SMEM prefetch (num_groups,) i32  group -> image row-window block index
    valid_ref  : SMEM prefetch (num_groups,) i32  group -> number of real (non-pad) boxes
    box_ref    : SMEM (num_groups*group_size*8,) f32 flat corners [x0,y0,x1,y1,x2,y2,x3,y3]
    basis_ref  : VMEM (4, 1, tile_p) f32 box-invariant bilinear grid basis (this P-tile)
    img_ref    : VMEM (1, C, crop_h*img_w) image row window of this group's image
    out_ref    : VMEM (1, group_size, C, tile_p) rectified ROI columns of this P-tile
    """
    del idx_ref                                  # consumed only by the image index_map
    g = pl.program_id(0)
    tp = tile_p
    K = crop_h * img_w
    w_dtype = jnp.bfloat16 if use_bf16 else jnp.float32

    # Row offset of this group's image window (rows inside the crop are local).
    row0 = (rowblk_ref[g] * crop_h).astype(jnp.float32)

    separable = (img_w % 8 == 0)
    if separable:
        # Coordinate grids generated directly at broadcast-ready 3-D shapes:
        # no reshape of materialized values -> no per-box Mosaic relayout.
        basis = basis_ref[...]                                                # (4,1,tp)
        yq = jax.lax.broadcasted_iota(jnp.int32, (crop_h, 1, tp), 0).astype(jnp.float32)
        xq = jax.lax.broadcasted_iota(jnp.int32, (1, img_w, tp), 1).astype(jnp.float32)
    else:
        # Layout-safe fallback for widths that are not sublane multiples.
        basis = basis_ref[...].reshape(4, tp)                                 # (4,tp)
        q = jax.lax.broadcasted_iota(jnp.int32, (K, 1), 0)
        r = q // img_w
        yq = r.astype(jnp.float32)                                            # (K,1)
        xq = (q - r * img_w).astype(jnp.float32)                              # (K,1)

    img = img_ref[0]                                                          # (C, K)

    def sample_box(t):
        base = (g * group_size + t) * 8
        x0 = box_ref[base + 0]; y0 = box_ref[base + 1]
        x1 = box_ref[base + 2]; y1 = box_ref[base + 3]
        x2 = box_ref[base + 4]; y2 = box_ref[base + 5]
        x3 = box_ref[base + 6]; y3 = box_ref[base + 7]

        # grid_sample(align_corners=False): sample position = pixel coord - 0.5.
        ix = (x0 * basis[0:1] + x1 * basis[1:2]
              + x2 * basis[2:3] + x3 * basis[3:4]) - 0.5
        iy = (y0 * basis[0:1] + y1 * basis[1:2]
              + y2 * basis[2:3] + y3 * basis[3:4]) - 0.5 - row0

        wy = jnp.maximum(0.0, 1.0 - jnp.abs(yq - iy))        # (crop_h,1,tp) | (K,tp)
        wx = jnp.maximum(0.0, 1.0 - jnp.abs(xq - ix))        # (1,img_w,tp)  | (K,tp)
        if use_bf16:
            # Build the big K x tp slab in bf16 (half vst traffic / vreg pressure);
            # replaces the old full-slab cast pass after the build.
            wy = wy.astype(w_dtype)
            wx = wx.astype(w_dtype)
        wt = (wy * wx).reshape(K, tp)                        # triangle-kernel weights

        # Per-box (C,K)@(K,tp) straight into its output slice: no K x (G*P)
        # concatenate copy, and only one weight slab is live at a time.
        out_ref[0, t] = jnp.dot(img, wt,
                                preferred_element_type=jnp.float32).astype(out_ref.dtype)

    for t in range(group_size):                              # static unroll (G small)
        if t == 0:
            sample_box(0)                                    # every group has >= 1 real box
        else:
            pl.when(t < valid_ref[g])(functools.partial(sample_box, t))


def quad_roi_forward(x_batch, boxes_batch, *, shrink_ratio=1.0, out_height=32,
                     max_ratio=8, group_size=2, use_bf16_matmul=True):
    """Equivalent of QuadROI.forward.

    x_batch     : (B, C, H, W) float NCHW feature maps
    boxes_batch : list (len B) of (n_i, 4, 2) quad corners in pixel coords
    returns     : ((N, C, out_h, out_w) float32, batch_sizes list)
    """
    out_h = max(int(out_height * shrink_ratio), 1)
    out_w = max(int(max_ratio * out_height * shrink_ratio), 1)
    P = out_h * out_w
    B, C, H, W = x_batch.shape

    batch_sizes = [int(np.asarray(b).shape[0]) for b in boxes_batch]
    N = int(sum(batch_sizes))
    if N == 0:
        return jnp.zeros((0, C, out_h, out_w), jnp.float32), batch_sizes

    G = max(1, min(int(group_size), max(batch_sizes)))

    # ---- host-side preprocessing (tiny, concrete values) ----
    padded_boxes = []       # per-image (ng*G, 8) arrays (padded with zero boxes)
    img_idx = []            # per-group source-image index
    group_spans = []        # per-group inclusive row span needed for nonzero weights
    valid_cnt = []          # per-group number of real (non-pad) boxes
    valid_rows = []         # rows of the padded output corresponding to real boxes
    row_cursor = 0
    for i, b in enumerate(boxes_batch):
        b = np.asarray(b, np.float32).reshape(-1, 4, 2) * float(shrink_ratio)
        nb = b.shape[0]
        if nb == 0:
            continue
        ng = -(-nb // G)
        pad = ng * G - nb
        bp = np.concatenate([b, np.zeros((pad, 4, 2), np.float32)], 0) if pad else b
        for gi in range(ng):
            nvalid = min((gi + 1) * G, nb) - gi * G
            ys = b[gi * G: gi * G + nvalid, :, 1]             # real boxes only
            lo = int(np.clip(np.floor(ys.min() - 0.5), 0, H - 1))
            hi = int(np.clip(np.floor(ys.max() - 0.5) + 1, 0, H - 1))
            group_spans.append((lo, hi))
            img_idx.append(i)
            valid_cnt.append(nvalid)
        padded_boxes.append(bp.reshape(ng * G, 8))
        valid_rows.extend(range(row_cursor, row_cursor + nb))
        row_cursor += ng * G
    num_groups = len(img_idx)
    M = num_groups * G

    # ---- choose a static aligned row-window (bbox crop) height ----
    # crop_h must divide H, be a multiple of 8, and keep crop_h*W a multiple of 128
    # (BlockSpec lane rule); falls back to the full height when boxes span the image.
    crop_h = H
    for cand in range(8, H, 8):
        if H % cand or (cand * W) % 128:
            continue
        if all(lo // cand == hi // cand for lo, hi in group_spans):
            crop_h = cand
            break
    # TODO(synk): an element-offset (pl.Element) row window would avoid the crop_h=H
    # fallback when a box straddles an aligned boundary; kept block-aligned for safety.
    row_blk = [lo // crop_h for lo, _ in group_spans]
    K = crop_h * W

    # ---- P-tiling so the per-step weight slab fits VMEM on every generation ----
    wt_bytes = 2 if use_bf16_matmul else 4
    img_bytes = 2 if use_bf16_matmul else 4
    try:
        vmem_cap = int(getattr(pltpu.get_tpu_info(), "vmem_capacity_bytes", 64 << 20))
    except Exception:  # defensive: size for the smallest generation (v7x, 64 MiB)
        vmem_cap = 64 << 20
    budget = int(vmem_cap * 0.6)

    def step_bytes(tp):
        return (2 * C * K * img_bytes          # double-buffered image window
                + 2 * G * C * tp * 4           # double-buffered output block
                + 2 * 4 * tp * 4               # basis block
                + 2 * K * tp * wt_bytes        # live weight slab (+ headroom)
                + (crop_h + W) * tp * 8)       # wy/wx/coord temporaries

    cands = ([tp for tp in range(P, 0, -128) if P % tp == 0]
             if P % 128 == 0 else [P])         # non-multiple-of-128 P: full (lane-sparse) dim
    tile_P = cands[-1]
    for tp in cands:                           # descending: biggest tile that fits
        if step_bytes(tp) <= budget:
            tile_P = tp
            break
    num_p_tiles = P // tile_P
    vmem_limit = min(int(vmem_cap * 0.9), max(32 << 20, 2 * step_bytes(tile_P)))

    boxes_flat = jnp.asarray(
        np.concatenate(padded_boxes, axis=0).reshape(-1), dtype=jnp.float32)   # (M*8,) 1-D
    img_idx_arr = jnp.asarray(np.asarray(img_idx, np.int32))
    row_blk_arr = jnp.asarray(np.asarray(row_blk, np.int32))
    valid_arr = jnp.asarray(np.asarray(valid_cnt, np.int32))

    # Box-invariant bilinear grid basis: gx = x0*b0 + x1*b1 + x2*b2 + x3*b3 (same for y),
    # passed already shaped (4, 1, P) so the kernel never reshapes it.
    vv = (np.arange(out_h, dtype=np.float32) / max(out_h - 1, 1)).repeat(out_w)
    uu = np.tile(np.arange(out_w, dtype=np.float32) / max(out_w - 1, 1), out_h)
    basis = jnp.asarray(np.stack([(1 - vv) * (1 - uu), (1 - vv) * uu,
                                  vv * uu, vv * (1 - uu)], 0).reshape(4, 1, P),
                        jnp.float32)

    img_dtype = jnp.bfloat16 if use_bf16_matmul else jnp.float32
    x_flat = x_batch.reshape(B, C, H * W).astype(img_dtype)

    kernel = functools.partial(
        _quad_roi_kernel, group_size=G, img_w=W, crop_h=crop_h, tile_p=tile_P,
        use_bf16=use_bf16_matmul)

    grid_spec = pltpu.PrefetchScalarGridSpec(
        num_scalar_prefetch=3,          # img_idx, row_blk, valid drive index maps / pl.when
        grid=(num_groups, num_p_tiles),
        in_specs=[
            # flattened quad corners: 1-D SMEM (scalar reads; avoids 2-D SMEM padding)
            pl.BlockSpec(memory_space=pltpu.MemorySpace.SMEM),
            # box-invariant basis, P-tiled
            pl.BlockSpec((4, 1, tile_P), lambda g, pj, idx, rblk, val: (0, 0, pj)),
            # cropped image row window; index independent of pj -> re-DMA skipped across P-tiles
            pl.BlockSpec((1, C, K), lambda g, pj, idx, rblk, val: (idx[g], 0, rblk[g])),
        ],
        out_specs=pl.BlockSpec((1, G, C, tile_P),
                               lambda g, pj, idx, rblk, val: (g, 0, 0, pj)),
    )

    cost = pl.CostEstimate(
        flops=int(2 * num_groups * G * C * K * P),
        transcendentals=0,
        bytes_accessed=int(num_groups * C * K * img_bytes
                           + num_groups * G * C * P * 4 + M * 8 * 4),
    )

    out = pl.pallas_call(
        kernel,
        grid_spec=grid_spec,
        out_shape=jax.ShapeDtypeStruct((num_groups, G, C, P), jnp.float32),
        compiler_params=pltpu.CompilerParams(
            # No cross-step accumulator: both axes are independent -> let v7x split
            # grid points across both TensorCores (neutral on single-TC v5e/v6e).
            dimension_semantics=("parallel", "parallel"),
            vmem_limit_bytes=int(vmem_limit)),
        cost_estimate=cost,
    )(img_idx_arr, row_blk_arr, valid_arr, boxes_flat, basis, x_flat)

    # Kernel already emits (num_groups, G, C, P): epilogue is a pure reshape (no transpose).
    out = out.reshape(M, C, out_h, out_w)
    if len(valid_rows) != M:                       # drop padded group slots
        out = out[jnp.asarray(valid_rows, dtype=jnp.int32)]
    return out, batch_sizes


def _reference(x_batch, boxes_batch, *, shrink_ratio=1.0, out_height=32, max_ratio=8):
    """Numpy reference mirroring the PyTorch module (grid_sample bilinear, zero
    padding, align_corners=False) via explicit gather — independent of the
    kernel's triangle-matmul formulation."""
    out_h = max(int(out_height * shrink_ratio), 1)
    out_w = max(int(max_ratio * out_height * shrink_ratio), 1)
    x_batch = np.asarray(x_batch, np.float32)
    B, C, H, W = x_batch.shape
    outs = []
    for bi, quads in enumerate(boxes_batch):
        img = x_batch[bi]
        for quad in np.asarray(quads, np.float32) * shrink_ratio:
            left = np.linspace(quad[0], quad[3], out_h)
            right = np.linspace(quad[1], quad[2], out_h)
            grid = np.stack([np.linspace(left[i], right[i], out_w)
                             for i in range(out_h)], axis=0)          # (out_h,out_w,2)
            gx = grid[..., 0] * 2.0 / W - 1.0
            gy = grid[..., 1] * 2.0 / H - 1.0
            ix = ((gx + 1.0) * W - 1.0) / 2.0
            iy = ((gy + 1.0) * H - 1.0) / 2.0
            xf = np.floor(ix); yf = np.floor(iy)
            wx1 = ix - xf; wx0 = 1.0 - wx1
            wy1 = iy - yf; wy0 = 1.0 - wy1

            def g(yy, xx):
                inb = (xx >= 0) & (xx < W) & (yy >= 0) & (yy < H)
                xc = np.clip(xx, 0, W - 1).astype(np.int32)
                yc = np.clip(yy, 0, H - 1).astype(np.int32)
                return img[:, yc, xc] * inb[None]

            out = (g(yf, xf) * (wy0 * wx0)[None]
                   + g(yf, xf + 1) * (wy0 * wx1)[None]
                   + g(yf + 1, xf) * (wy1 * wx0)[None]
                   + g(yf + 1, xf + 1) * (wy1 * wx1)[None])
            outs.append(out)
    return np.stack(outs, axis=0).astype(np.float32)


if __name__ == "__main__":
    key = jax.random.PRNGKey(0)
    k1, k2, k3 = jax.random.split(key, 3)

    # Small shapes consistent with the module: batch=2, channels=4, 16x16 images,
    # out_height=8, max_ratio=2 -> ROI size 8x16.
    B, C, H, W = 2, 4, 16, 16
    x_batch = jax.random.uniform(k1, (B, C, H, W), dtype=jnp.float32)

    # --- Test 1: spatially clustered quads (exercises the per-group row-window crop;
    #     crop_h resolves to 8 with different windows per image) + bf16 MXU path.
    #     x corners extend slightly out of the image to hit zero padding. ---
    r = jax.random.uniform(k2, (B, 2, 4, 2), dtype=jnp.float32)
    xs = r[..., 0] * float(W + 4) - 2.0                       # x in [-2, W+2)
    ys = jnp.stack([r[0, ..., 1] * 6.0 + 0.2,                 # image 0: rows ~[0.2, 6.2)
                    r[1, ..., 1] * 6.0 + 9.0], axis=0)        # image 1: rows ~[9, 15)
    boxes_batch1 = [jnp.stack([xs, ys], axis=-1)[i] for i in range(B)]

    out1, bs1 = quad_roi_forward(x_batch, boxes_batch1, shrink_ratio=1.0,
                                 out_height=8, max_ratio=2,
                                 group_size=2, use_bf16_matmul=True)
    out1 = jax.block_until_ready(out1)
    ref1 = _reference(np.asarray(x_batch), [np.asarray(b) for b in boxes_batch1],
                      shrink_ratio=1.0, out_height=8, max_ratio=2)
    np.testing.assert_allclose(np.asarray(out1), ref1, rtol=1e-2, atol=1e-2)  # bf16 MXU
    assert bs1 == [2, 2]

    # --- Test 2: unbalanced box counts (group padding + pl.when pad-slot skip +
    #     valid-row gather), quads spanning / exceeding the image (zero padding in
    #     x and y, crop falls back to full height), exact f32 matmul path. ---
    r2 = jax.random.uniform(k3, (4, 4, 2), dtype=jnp.float32,
                            minval=-2.0, maxval=float(W + 2))
    boxes_batch2 = [r2[:3], r2[3:]]                           # 3 boxes + 1 box
    out2, bs2 = quad_roi_forward(x_batch, boxes_batch2, shrink_ratio=1.0,
                                 out_height=8, max_ratio=2,
                                 group_size=2, use_bf16_matmul=False)
    out2 = jax.block_until_ready(out2)
    ref2 = _reference(np.asarray(x_batch), [np.asarray(b) for b in boxes_batch2],
                      shrink_ratio=1.0, out_height=8, max_ratio=2)
    np.testing.assert_allclose(np.asarray(out2), ref2, rtol=1e-4, atol=1e-4)
    assert bs2 == [3, 1]

    # TODO(synk): the `_vis` / `vis()` cv2 image-dump branches of the module are file
    # I/O and are not translated.
    print("KERNEL_OK")
</pallas_src>

<mosaic_0001>
module attributes {stable_mosaic.version = 11 : i64} {
  func.func @_quad_roi_kernel(%arg0: i32, %arg1: i32, %arg2: memref<2xi32, #tpu.memory_space<smem>>, %arg3: memref<2xi32, #tpu.memory_space<smem>>, %arg4: memref<2xi32, #tpu.memory_space<smem>>, %arg5: memref<32xf32, #tpu.memory_space<smem>>, %arg6: memref<4x1x128xf32, #tpu.memory_space<vmem>>, %arg7: memref<1x4x128xbf16, #tpu.memory_space<vmem>>, %arg8: memref<1x2x4x128xf32, #tpu.memory_space<vmem>>) attributes {dimension_semantics = [#tpu.dimension_semantics<parallel>, #tpu.dimension_semantics<parallel>], iteration_bounds = array<i64: 2, 1>, scalar_prefetch = 3 : i64, scratch_operands = 0 : i64, tpu.core_type = #tpu.core_type<tc>, window_params = [{transform_indices = @transform_0, window_bounds = array<i64: 32>}, {transform_indices = @transform_1, window_bounds = array<i64: 4, 1, 128>}, {transform_indices = @transform_2, window_bounds = array<i64: 1, 4, 128>}, {transform_indices = @transform_3, window_bounds = array<i64: 1, 2, 4, 128>}]} {
    %0 = arith.index_cast %arg0 : i32 to index
    %1 = memref.load %arg3[%0] : memref<2xi32, #tpu.memory_space<smem>>
    %c8_i32 = arith.constant 8 : i32
    %2 = arith.muli %1, %c8_i32 : i32
    %3 = arith.sitofp %2 : i32 to f32
    %c0 = arith.constant 0 : index
    %c0_0 = arith.constant 0 : index
    %c0_1 = arith.constant 0 : index
    %4 = vector.load %arg6[%c0, %c0_0, %c0_1] : memref<4x1x128xf32, #tpu.memory_space<vmem>>, vector<4x1x128xf32>
    %5 = tpu.iota {dimensions = array<i32: 0>} : vector<8x1x128xi32>
    %6 = arith.sitofp %5 : vector<8x1x128xi32> to vector<8x1x128xf32>
    %7 = tpu.iota {dimensions = array<i32: 1>} : vector<1x16x128xi32>
    %8 = arith.sitofp %7 : vector<1x16x128xi32> to vector<1x16x128xf32>
    %c0_2 = arith.constant 0 : index
    %c0_3 = arith.constant 0 : index
    %c0_4 = arith.constant 0 : index
    %9 = vector.load %arg7[%c0_2, %c0_3, %c0_4] : memref<1x4x128xbf16, #tpu.memory_space<vmem>>, vector<1x4x128xbf16>
    %10 = vector.shape_cast %9 : vector<1x4x128xbf16> to vector<4x128xbf16>
    %c2_i32 = arith.constant 2 : i32
    %11 = arith.muli %arg0, %c2_i32 : i32
    %c0_i32 = arith.constant 0 : i32
    %12 = arith.addi %11, %c0_i32 : i32
    %c8_i32_5 = arith.constant 8 : i32
    %13 = arith.muli %12, %c8_i32_5 : i32
    %c0_i32_6 = arith.constant 0 : i32
    %14 = arith.addi %13, %c0_i32_6 : i32
    %15 = arith.index_cast %14 : i32 to index
    %16 = memref.load %arg5[%15] : memref<32xf32, #tpu.memory_space<smem>>
    %c1_i32 = arith.constant 1 : i32
    %17 = arith.addi %13, %c1_i32 : i32
    %18 = arith.index_cast %17 : i32 to index
    %19 = memref.load %arg5[%18] : memref<32xf32, #tpu.memory_space<smem>>
    %c2_i32_7 = arith.constant 2 : i32
    %20 = arith.addi %13, %c2_i32_7 : i32
    %21 = arith.index_cast %20 : i32 to index
    %22 = memref.load %arg5[%21] : memref<32xf32, #tpu.memory_space<smem>>
    %c3_i32 = arith.constant 3 : i32
    %23 = arith.addi %13, %c3_i32 : i32
    %24 = arith.index_cast %23 : i32 to index
    %25 = memref.load %arg5[%24] : memref<32xf32, #tpu.memory_space<smem>>
    %c4_i32 = arith.constant 4 : i32
    %26 = arith.addi %13, %c4_i32 : i32
    %27 = arith.index_cast %26 : i32 to index
    %28 = memref.load %arg5[%27] : memref<32xf32, #tpu.memory_space<smem>>
    %c5_i32 = arith.constant 5 : i32
    %29 = arith.addi %13, %c5_i32 : i32
    %30 = arith.index_cast %29 : i32 to index
    %31 = memref.load %arg5[%30] : memref<32xf32, #tpu.memory_space<smem>>
    %c6_i32 = arith.constant 6 : i32
    %32 = arith.addi %13, %c6_i32 : i32
    %33 = arith.index_cast %32 : i32 to index
    %34 = memref.load %arg5[%33] : memref<32xf32, #tpu.memory_space<smem>>
    %c7_i32 = arith.constant 7 : i32
    %35 = arith.addi %13, %c7_i32 : i32
    %36 = arith.index_cast %35 : i32 to index
    %37 = memref.load %arg5[%36] : memref<32xf32, #tpu.memory_space<smem>>
    %38 = vector.extract_strided_slice %4 {offsets = [0, 0, 0], sizes = [1, 1, 128], strides = [1, 1, 1]} : vector<4x1x128xf32> to vector<1x1x128xf32>
    %39 = vector.broadcast %16 : f32 to vector<1x1x128xf32>
    %40 = arith.mulf %39, %38 : vector<1x1x128xf32>
    %41 = vector.extract_strided_slice %4 {offsets = [1, 0, 0], sizes = [1, 1, 128], strides = [1, 1, 1]} : vector<4x1x128xf32> to vector<1x1x128xf32>
    %42 = vector.broadcast %22 : f32 to vector<1x1x128xf32>
    %43 = arith.mulf %42, %41 : vector<1x1x128xf32>
    %44 = arith.addf %40, %43 : vector<1x1x128xf32>
    %45 = vector.extract_strided_slice %4 {offsets = [2, 0, 0], sizes = [1, 1, 128], strides = [1, 1, 1]} : vector<4x1x128xf32> to vector<1x1x128xf32>
    %46 = vector.broadcast %28 : f32 to vector<1x1x128xf32>
    %47 = arith.mulf %46, %45 : vector<1x1x128xf32>
    %48 = arith.addf %44, %47 : vector<1x1x128xf32>
    %49 = vector.extract_strided_slice %4 {offsets = [3, 0, 0], sizes = [1, 1, 128], strides = [1, 1, 1]} : vector<4x1x128xf32> to vector<1x1x128xf32>
    %50 = vector.broadcast %34 : f32 to vector<1x1x128xf32>
    %51 = arith.mulf %50, %49 : vector<1x1x128xf32>
    %52 = arith.addf %48, %51 : vector<1x1x128xf32>
    %cst = arith.constant 5.000000e-01 : f32
    %53 = vector.broadcast %cst : f32 to vector<1x1x128xf32>
    %54 = arith.subf %52, %53 : vector<1x1x128xf32>
    %55 = vector.extract_strided_slice %4 {offsets = [0, 0, 0], sizes = [1, 1, 128], strides = [1, 1, 1]} : vector<4x1x128xf32> to vector<1x1x128xf32>
    %56 = vector.broadcast %19 : f32 to vector<1x1x128xf32>
    %57 = arith.mulf %56, %55 : vector<1x1x128xf32>
    %58 = vector.extract_strided_slice %4 {offsets = [1, 0, 0], sizes = [1, 1, 128], strides = [1, 1, 1]} : vector<4x1x128xf32> to vector<1x1x128xf32>
    %59 = vector.broadcast %25 : f32 to vector<1x1x128xf32>
    %60 = arith.mulf %59, %58 : vector<1x1x128xf32>
    %61 = arith.addf %57, %60 : vector<1x1x128xf32>
    %62 = vector.extract_strided_slice %4 {offsets = [2, 0, 0], sizes = [1, 1, 128], strides = [1, 1, 1]} : vector<4x1x128xf32> to vector<1x1x128xf32>
    %63 = vector.broadcast %31 : f32 to vector<1x1x128xf32>
    %64 = arith.mulf %63, %62 : vector<1x1x128xf32>
    %65 = arith.addf %61, %64 : vector<1x1x128xf32>
    %66 = vector.extract_strided_slice %4 {offsets = [3, 0, 0], sizes = [1, 1, 128], strides = [1, 1, 1]} : vector<4x1x128xf32> to vector<1x1x128xf32>
    %67 = vector.broadcast %37 : f32 to vector<1x1x128xf32>
    %68 = arith.mulf %67, %66 : vector<1x1x128xf32>
    %69 = arith.addf %65, %68 : vector<1x1x128xf32>
    %cst_8 = arith.constant 5.000000e-01 : f32
    %70 = vector.broadcast %cst_8 : f32 to vector<1x1x128xf32>
    %71 = arith.subf %69, %70 : vector<1x1x128xf32>
    %72 = vector.broadcast %3 : f32 to vector<1x1x128xf32>
    %73 = arith.subf %71, %72 : vector<1x1x128xf32>
    %74 = vector.broadcast %73 : vector<1x1x128xf32> to vector<8x1x128xf32>
    %75 = arith.subf %6, %74 : vector<8x1x128xf32>
    %76 = math.absf %75 : vector<8x1x128xf32>
    %cst_9 = arith.constant 1.000000e+00 : f32
    %77 = vector.broadcast %cst_9 : f32 to vector<8x1x128xf32>
    %78 = arith.subf %77, %76 : vector<8x1x128xf32>
    %cst_10 = arith.constant 0.000000e+00 : f32
    %79 = vector.broadcast %cst_10 : f32 to vector<8x1x128xf32>
    %80 = arith.maximumf %79, %78 : vector<8x1x128xf32>
    %81 = vector.broadcast %54 : vector<1x1x128xf32> to vector<1x16x128xf32>
    %82 = arith.subf %8, %81 : vector<1x16x128xf32>
    %83 = math.absf %82 : vector<1x16x128xf32>
    %cst_11 = arith.constant 1.000000e+00 : f32
    %84 = vector.broadcast %cst_11 : f32 to vector<1x16x128xf32>
    %85 = arith.subf %84, %83 : vector<1x16x128xf32>
    %cst_12 = arith.constant 0.000000e+00 : f32
    %86 = vector.broadcast %cst_12 : f32 to vector<1x16x128xf32>
    %87 = arith.maximumf %86, %85 : vector<1x16x128xf32>
    %88 = arith.truncf %80 : vector<8x1x128xf32> to vector<8x1x128xbf16>
    %89 = arith.truncf %87 : vector<1x16x128xf32> to vector<1x16x128xbf16>
    %90 = vector.broadcast %88 : vector<8x1x128xbf16> to vector<8x16x128xbf16>
    %91 = vector.broadcast %89 : vector<1x16x128xbf16> to vector<8x16x128xbf16>
    %92 = arith.mulf %90, %91 : vector<8x16x128xbf16>
    %93 = vector.shape_cast %92 : vector<8x16x128xbf16> to vector<128x128xbf16>
    %cst_13 = arith.constant dense<0.000000e+00> : vector<4x128xf32>
    %94 = tpu.matmul %10, %93, %cst_13 {dimension_numbers = #tpu.dot_dimension_numbers<[1], [0], [0], [1], [0, 0, 1, 1], [], []>} : vector<4x128xbf16>, vector<128x128xbf16>, vector<4x128xf32> -> vector<4x128xf32>
    %c0_14 = arith.constant 0 : index
    %c0_15 = arith.constant 0 : index
    %c0_16 = arith.constant 0 : index
    %c0_17 = arith.constant 0 : index
    %95 = vector.load %arg8[%c0_14, %c0_15, %c0_16, %c0_17] : memref<1x2x4x128xf32, #tpu.memory_space<vmem>>, vector<1x1x4x128xf32>
    %96 = vector.shape_cast %95 : vector<1x1x4x128xf32> to vector<4x128xf32>
    %97 = vector.shape_cast %94 : vector<4x128xf32> to vector<1x1x4x128xf32>
    tpu.vector_store %arg8[%c0_14, %c0_15, %c0_16, %c0_17], %97 {strides = array<i32>} : memref<1x2x4x128xf32, #tpu.memory_space<vmem>>, vector<1x1x4x128xf32>,
    %98 = arith.index_cast %arg0 : i32 to index
    %99 = memref.load %arg4[%98] : memref<2xi32, #tpu.memory_space<smem>>
    %c1_i32_18 = arith.constant 1 : i32
    %100 = arith.cmpi sgt, %99, %c1_i32_18 : i32
    %101 = arith.extui %100 : i1 to i32
    %c0_i32_19 = arith.constant 0 : i32
    %102 = arith.cmpi ne, %101, %c0_i32_19 : i32
    scf.if %102 {
      %c2_i32_20 = arith.constant 2 : i32
      %103 = arith.muli %arg0, %c2_i32_20 : i32
      %c1_i32_21 = arith.constant 1 : i32
      %104 = arith.addi %103, %c1_i32_21 : i32
      %c8_i32_22 = arith.constant 8 : i32
      %105 = arith.muli %104, %c8_i32_22 : i32
      %c0_i32_23 = arith.constant 0 : i32
      %106 = arith.addi %105, %c0_i32_23 : i32
      %107 = arith.index_cast %106 : i32 to index
      %108 = memref.load %arg5[%107] : memref<32xf32, #tpu.memory_space<smem>>
      %c1_i32_24 = arith.constant 1 : i32
      %109 = arith.addi %105, %c1_i32_24 : i32
      %110 = arith.index_cast %109 : i32 to index
      %111 = memref.load %arg5[%110] : memref<32xf32, #tpu.memory_space<smem>>
      %c2_i32_25 = arith.constant 2 : i32
      %112 = arith.addi %105, %c2_i32_25 : i32
      %113 = arith.index_cast %112 : i32 to index
      %114 = memref.load %arg5[%113] : memref<32xf32, #tpu.memory_space<smem>>
      %c3_i32_26 = arith.constant 3 : i32
      %115 = arith.addi %105, %c3_i32_26 : i32
      %116 = arith.index_cast %115 : i32 to index
      %117 = memref.load %arg5[%116] : memref<32xf32, #tpu.memory_space<smem>>
      %c4_i32_27 = arith.constant 4 : i32
      %118 = arith.addi %105, %c4_i32_27 : i32
      %119 = arith.index_cast %118 : i32 to index
      %120 = memref.load %arg5[%119] : memref<32xf32, #tpu.memory_space<smem>>
      %c5_i32_28 = arith.constant 5 : i32
      %121 = arith.addi %105, %c5_i32_28 : i32
      %122 = arith.index_cast %121 : i32 to index
      %123 = memref.load %arg5[%122] : memref<32xf32, #tpu.memory_space<smem>>
      %c6_i32_29 = arith.constant 6 : i32
      %124 = arith.addi %105, %c6_i32_29 : i32
      %125 = arith.index_cast %124 : i32 to index
      %126 = memref.load %arg5[%125] : memref<32xf32, #tpu.memory_space<smem>>
      %c7_i32_30 = arith.constant 7 : i32
      %127 = arith.addi %105, %c7_i32_30 : i32
      %128 = arith.index_cast %127 : i32 to index
      %129 = memref.load %arg5[%128] : memref<32xf32, #tpu.memory_space<smem>>
      %130 = vector.extract_strided_slice %4 {offsets = [0, 0, 0], sizes = [1, 1, 128], strides = [1, 1, 1]} : vector<4x1x128xf32> to vector<1x1x128xf32>
      %131 = vector.broadcast %108 : f32 to vector<1x1x128xf32>
      %132 = arith.mulf %131, %130 : vector<1x1x128xf32>
      %133 = vector.extract_strided_slice %4 {offsets = [1, 0, 0], sizes = [1, 1, 128], strides = [1, 1, 1]} : vector<4x1x128xf32> to vector<1x1x128xf32>
      %134 = vector.broadcast %114 : f32 to vector<1x1x128xf32>
      %135 = arith.mulf %134, %133 : vector<1x1x128xf32>
      %136 = arith.addf %132, %135 : vector<1x1x128xf32>
      %137 = vector.extract_strided_slice %4 {offsets = [2, 0, 0], sizes = [1, 1, 128], strides = [1, 1, 1]} : vector<4x1x128xf32> to vector<1x1x128xf32>
      %138 = vector.broadcast %120 : f32 to vector<1x1x128xf32>
      %139 = arith.mulf %138, %137 : vector<1x1x128xf32>
      %140 = arith.addf %136, %139 : vector<1x1x128xf32>
      %141 = vector.extract_strided_slice %4 {offsets = [3, 0, 0], sizes = [1, 1, 128], strides = [1, 1, 1]} : vector<4x1x128xf32> to vector<1x1x128xf32>
      %142 = vector.broadcast %126 : f32 to vector<1x1x128xf32>
      %143 = arith.mulf %142, %141 : vector<1x1x128xf32>
      %144 = arith.addf %140, %143 : vector<1x1x128xf32>
      %cst_31 = arith.constant 5.000000e-01 : f32
      %145 = vector.broadcast %cst_31 : f32 to vector<1x1x128xf32>
      %146 = arith.subf %144, %145 : vector<1x1x128xf32>
      %147 = vector.extract_strided_slice %4 {offsets = [0, 0, 0], sizes = [1, 1, 128], strides = [1, 1, 1]} : vector<4x1x128xf32> to vector<1x1x128xf32>
      %148 = vector.broadcast %111 : f32 to vector<1x1x128xf32>
      %149 = arith.mulf %148, %147 : vector<1x1x128xf32>
      %150 = vector.extract_strided_slice %4 {offsets = [1, 0, 0], sizes = [1, 1, 128], strides = [1, 1, 1]} : vector<4x1x128xf32> to vector<1x1x128xf32>
      %151 = vector.broadcast %117 : f32 to vector<1x1x128xf32>
      %152 = arith.mulf %151, %150 : vector<1x1x128xf32>
      %153 = arith.addf %149, %152 : vector<1x1x128xf32>
      %154 = vector.extract_strided_slice %4 {offsets = [2, 0, 0], sizes = [1, 1, 128], strides = [1, 1, 1]} : vector<4x1x128xf32> to vector<1x1x128xf32>
      %155 = vector.broadcast %123 : f32 to vector<1x1x128xf32>
      %156 = arith.mulf %155, %154 : vector<1x1x128xf32>
      %157 = arith.addf %153, %156 : vector<1x1x128xf32>
      %158 = vector.extract_strided_slice %4 {offsets = [3, 0, 0], sizes = [1, 1, 128], strides = [1, 1, 1]} : vector<4x1x128xf32> to vector<1x1x128xf32>
      %159 = vector.broadcast %129 : f32 to vector<1x1x128xf32>
      %160 = arith.mulf %159, %158 : vector<1x1x128xf32>
      %161 = arith.addf %157, %160 : vector<1x1x128xf32>
      %cst_32 = arith.constant 5.000000e-01 : f32
      %162 = vector.broadcast %cst_32 : f32 to vector<1x1x128xf32>
      %163 = arith.subf %161, %162 : vector<1x1x128xf32>
      %164 = vector.broadcast %3 : f32 to vector<1x1x128xf32>
      %165 = arith.subf %163, %164 : vector<1x1x128xf32>
      %166 = vector.broadcast %165 : vector<1x1x128xf32> to vector<8x1x128xf32>
      %167 = arith.subf %6, %166 : vector<8x1x128xf32>
      %168 = math.absf %167 : vector<8x1x128xf32>
      %cst_33 = arith.constant 1.000000e+00 : f32
      %169 = vector.broadcast %cst_33 : f32 to vector<8x1x128xf32>
      %170 = arith.subf %169, %168 : vector<8x1x128xf32>
      %cst_34 = arith.constant 0.000000e+00 : f32
      %171 = vector.broadcast %cst_34 : f32 to vector<8x1x128xf32>
      %172 = arith.maximumf %171, %170 : vector<8x1x128xf32>
      %173 = vector.broadcast %146 : vector<1x1x128xf32> to vector<1x16x128xf32>
      %174 = arith.subf %8, %173 : vector<1x16x128xf32>
      %175 = math.absf %174 : vector<1x16x128xf32>
      %cst_35 = arith.constant 1.000000e+00 : f32
      %176 = vector.broadcast %cst_35 : f32 to vector<1x16x128xf32>
      %177 = arith.subf %176, %175 : vector<1x16x128xf32>
      %cst_36 = arith.constant 0.000000e+00 : f32
      %178 = vector.broadcast %cst_36 : f32 to vector<1x16x128xf32>
      %179 = arith.maximumf %178, %177 : vector<1x16x128xf32>
      %180 = arith.truncf %172 : vector<8x1x128xf32> to vector<8x1x128xbf16>
      %181 = arith.truncf %179 : vector<1x16x128xf32> to vector<1x16x128xbf16>
      %182 = vector.broadcast %180 : vector<8x1x128xbf16> to vector<8x16x128xbf16>
      %183 = vector.broadcast %181 : vector<1x16x128xbf16> to vector<8x16x128xbf16>
      %184 = arith.mulf %182, %183 : vector<8x16x128xbf16>
      %185 = vector.shape_cast %184 : vector<8x16x128xbf16> to vector<128x128xbf16>
      %cst_37 = arith.constant dense<0.000000e+00> : vector<4x128xf32>
      %186 = tpu.matmul %10, %185, %cst_37 {dimension_numbers = #tpu.dot_dimension_numbers<[1], [0], [0], [1], [0, 0, 1, 1], [], []>} : vector<4x128xbf16>, vector<128x128xbf16>, vector<4x128xf32> -> vector<4x128xf32>
      %c0_38 = arith.constant 0 : index
      %c1 = arith.constant 1 : index
      %c0_39 = arith.constant 0 : index
      %c0_40 = arith.constant 0 : index
      %187 = vector.load %arg8[%c0_38, %c1, %c0_39, %c0_40] : memref<1x2x4x128xf32, #tpu.memory_space<vmem>>, vector<1x1x4x128xf32>
      %188 = vector.shape_cast %187 : vector<1x1x4x128xf32> to vector<4x128xf32>
      %189 = vector.shape_cast %186 : vector<4x128xf32> to vector<1x1x4x128xf32>
      tpu.vector_store %arg8[%c0_38, %c1, %c0_39, %c0_40], %189 {strides = array<i32>} : memref<1x2x4x128xf32, #tpu.memory_space<vmem>>, vector<1x1x4x128xf32>,
    } else {
    }
    return
  }
  func.func @transform_0(%arg0: i32, %arg1: i32, %arg2: memref<2xi32, #tpu.memory_space<smem>>, %arg3: memref<2xi32, #tpu.memory_space<smem>>, %arg4: memref<2xi32, #tpu.memory_space<smem>>) -> i32 {
    %c0_i32 = arith.constant 0 : i32
    %c0_i32_0 = arith.constant 0 : i32
    return %c0_i32 : i32
  }
  func.func @transform_1(%arg0: i32, %arg1: i32, %arg2: memref<2xi32, #tpu.memory_space<smem>>, %arg3: memref<2xi32, #tpu.memory_space<smem>>, %arg4: memref<2xi32, #tpu.memory_space<smem>>) -> (i32, i32, i32) {
    %c0_i32 = arith.constant 0 : i32
    %c0_i32_0 = arith.constant 0 : i32
    %c0_i32_1 = arith.constant 0 : i32
    return %c0_i32, %c0_i32_0, %arg1 : i32, i32, i32
  }
  func.func @transform_2(%arg0: i32, %arg1: i32, %arg2: memref<2xi32, #tpu.memory_space<smem>>, %arg3: memref<2xi32, #tpu.memory_space<smem>>, %arg4: memref<2xi32, #tpu.memory_space<smem>>) -> (i32, i32, i32) {
    %0 = arith.index_cast %arg0 : i32 to index
    %1 = memref.load %arg2[%0] : memref<2xi32, #tpu.memory_space<smem>>
    %2 = arith.index_cast %arg0 : i32 to index
    %3 = memref.load %arg3[%2] : memref<2xi32, #tpu.memory_space<smem>>
    %c0_i32 = arith.constant 0 : i32
    %c0_i32_0 = arith.constant 0 : i32
    return %1, %c0_i32, %3 : i32, i32, i32
  }
  func.func @transform_3(%arg0: i32, %arg1: i32, %arg2: memref<2xi32, #tpu.memory_space<smem>>, %arg3: memref<2xi32, #tpu.memory_space<smem>>, %arg4: memref<2xi32, #tpu.memory_space<smem>>) -> (i32, i32, i32, i32) {
    %c0_i32 = arith.constant 0 : i32
    %c0_i32_0 = arith.constant 0 : i32
    %c0_i32_1 = arith.constant 0 : i32
    return %arg0, %c0_i32, %c0_i32_0, %arg1 : i32, i32, i32, i32
  }
}

</mosaic_0001>

<bundles_post_ra>
// kernel: tpu_custom_call.1
= control target key start
LH: loop header
LB: loop body
LE: loop exit
PB: predicated region body
PF: predicated region fallthrough
CT: control target
= control target key end

     0   :  { %s1436_s0 = inlined_call_operand.hbm [shape: s32[2], index: 0, kind: input, shape index: {}]   ;;  %s1437_s3 = inlined_call_operand.vmem [shape: f32[32], index: 3, kind: input, shape index: {}]   ;;  %s1438_s4 = inlined_call_operand.vmem [shape: f32[4,1,128], index: 4, kind: input, shape index: {}]   ;;  %s1439_s5 = inlined_call_operand.vmem [shape: bf16[2,4,256], index: 5, kind: input, shape index: {}]   ;;  %s1440_s6 = inlined_call_operand.hbm [shape: f32[2,2,4,128], index: 6, kind: output, shape index: {}]   ;;  %s1441_s1 = inlined_call_operand.vmem [shape: s32[2], index: 1, kind: input, shape index: {}]   ;;  %s1442_s2 = inlined_call_operand.vmem [shape: s32[2], index: 2, kind: input, shape index: {}]  }
   0x1   :  { %1444 = sst [smem:[#allocation13_spill]] %s1437_s3  ;;  %s964_s23 = scalar_lea.hbm %s1436_s0, 16 }
   0x2   :  { %p965_p0 = scmp.ne.s32.totalorder %s1436_s0, %s964_s23  ;;  %p968_p1 = scmp.lt.u32.totalorder %s964_s23, %s1436_s0 }
   0x4   :  { %p970_p2 = pnand %p968_p1, %p965_p0 }
   0x6   :  { %973 = shalt.err (!%p970_p2)  }
   0x7   :  { %s1099_s28 = smov [#allocation3]   ;;  %s13_s9 = sshll.u32 %s1441_s1, 4  ;;  %s14_s9 = int_to_ptr.vmem [resolvable:$true] %s13_s9 }
   0x8   :  { %12 = dma.hbm_to_smem %s1436_s0, 16, %s1099_s28, [#allocation2] }
   0x9   :  { %s17_s12 = sshll.u32 %s1442_s2, 4  ;;  %s974_s13 = scalar_lea.vmem %s14_s9, 16  ;;  %s18_s12 = int_to_ptr.vmem [resolvable:$true] %s17_s12 }
   0xa   :  { %p975_p3 = scmp.ne.s32.totalorder %s14_s9, %s974_s13  ;;  %p979_p4 = scmp.lt.s32.totalorder %s14_s9, %s14_s9 }
   0xb   :  { %p980_p5 = scmp.lt.s32.totalorder %s974_s13, %s974_s13 }
   0xd   :  { %p981_p6 = por %p980_p5, %p979_p4 }
   0xf   :  { %p982_p7 = pnand %p981_p6, %p975_p3 }
  0x11   :  { %985 = shalt.err (!%p982_p7)  }
  0x12   :  { %s1100_s14 = smov [#allocation4]   ;;  %s986_s0 = scalar_lea.vmem %s18_s12, 16 }
  0x13   :  { %16 = dma.vmem_to_smem %s14_s9, 16, %s1100_s14, [#allocation2] }
  0x14   :  { %p987_p8 = scmp.ne.s32.totalorder %s18_s12, %s986_s0  ;;  %p991_p9 = scmp.lt.s32.totalorder %s18_s12, %s18_s12 }
  0x15   :  { %p992_p10 = scmp.lt.s32.totalorder %s986_s0, %s986_s0 }
  0x17   :  { %p993_p11 = por %p992_p10, %p991_p9 }
  0x19   :  { %p994_p12 = pnand %p993_p11, %p987_p8 }
  0x1b   :  { %997 = shalt.err (!%p994_p12)  }
  0x1c   :  { %s1101_s1 = smov [#allocation5]  }
  0x1d   :  { %20 = dma.vmem_to_smem %s18_s12, 16, %s1101_s1, [#allocation2] }
  0x1e   :  { %1065 = dma.done.wait [#allocation2], 48 }
  0x1f   :  { %1066 = vsyncadd [#allocation2], 4294967248 }
  0x20   :  { %22 = sfence }
  0x21   :  { %23 = vsyncpa [#allocation8], 0 }
  0x22   :  { %24 = vsyncpa [#allocation7], 0 }
  0x23   :  { %26 = vsyncpa [#allocation7 + $0x1], 0  ;;  %s1163_s2 = smov 0   ;;  %s1165_s15 = smov 0  }
  0x24   :  { %s1167_s16 = smov 0   ;;  %s1169_s17 = smov 0  }
  0x25   :  { %s1171_s18 = smov 0   ;;  %s1173_s19 = smov 0  }
  0x26 LB: > { %s801_s20 = sadd.s32 4294967295, %s1097_s19   ;;  %s802_s21 = sadd.s32 4294967294, %s1097_s19   ;;  %s1097_s19 = sphi %s1173_s19, %s32_s19   ;;  %s1093_s18 = sphi %s1171_s18, %s1455_s18   ;;  %s1089_s17 = sphi %s1169_s17, %s1454_s17   ;;  %s1085_s16 = sphi %s1167_s16, %s1453_s16   ;;  %s1081_s15 = sphi %s1165_s15, %s1452_s15   ;;  %s1077_s2 = sphi %s1163_s2, %s1451_s2  }
  0x27   : > { %s44_s22 = sadd.s32 1, %s1093_s18  ;;  %s132_s23 = sadd.s32 1, %s1085_s16 }
  0x28   : > { %p46_p13 = scmp.ge.s32.totalorder %s44_s22, 2  ;;  %p142_p0 = scmp.ne.s32.totalorder %s1085_s16, %s1081_s15 }
  0x29   : > { %p143_p1 = scmp.eq.s32.totalorder %s801_s20, 1  ;;  %p148_p2 = scmp.ne.s32.totalorder %s1081_s15, %s1077_s2 }
  0x2a   : > { %s1457_s22 = smov (%p46_p13, %s44_s22), 0  ;;  %p149_p4 = scmp.eq.s32.totalorder %s802_s21, 1 }
  0x2b   : > { %p1203_p3 = por %p143_p1, %p142_p0  ;;  %s127_s25 = ssub.s32 %s1093_s18, %s1457_s22 }
  0x2c   : > { %p803_p5 = scmp.ge.s32.totalorder %s1097_s19, 1  ;;  %p130_p6 = scmp.eq.s32.totalorder %s127_s25, 0 }
  0x2d   : > { %p1210_p7 = por %p149_p4, %p148_p2  ;;  %p156_p8 = scmp.lt.s32.totalorder %s1097_s19, 3 }
  0x2e   : > { %s1216_s27 = scalar_select %p130_p6, %s1085_s16, %s132_s23  }
  0x2f   : > { %p1218_p9 = pnand %p803_p5, %p156_p8  ;;  %p1222_p10 = scmp.eq.s32.totalorder %s801_s20, 0 }
  0x30   : > { %s1449_s3 = sld [smem:[#allocation13_spill]] }
  0x31   : > { %p895_p11 = pneg %p1218_p9 }
  0x33   : > { %p896_p12 = pnand %p1222_p10, %p895_p11 }
  0x35   : > { %p1000_p0 = pneg %p896_p12 }
  0x36   : > { %s169_s8 = sshll.u32 %s1449_s3, 4  ;;  %s170_s8 = int_to_ptr.vmem [resolvable:$true] %s169_s8 }
  0x37   : > { %s998_s9 = scalar_lea.vmem %s170_s8, 16  ;;  %p1006_p4 = scmp.lt.s32.totalorder %s170_s8, %s170_s8 }
  0x38   : > { %p999_p13 = scmp.ne.s32.totalorder %s170_s8, %s998_s9  ;;  %p1007_p5 = scmp.lt.s32.totalorder %s998_s9, %s998_s9 }
  0x3a   : > { %p1001_p1 = pnand %p1000_p0, %p999_p13  ;;  %p1008_p6 = por %p1007_p5, %p1006_p4 }
  0x3c   : > { %p1002_p2 = pneg %p1001_p1 }
  0x3e   : > { %p1009_p8 = pnand %p1008_p6, %p1002_p2 }
  0x40   : > { %1012 = shalt.err (!%p1009_p8)
}
  0x41   : > { %s1102_s10 = smov [#allocation6]   ;;  %203 = sbr.rel (%p1218_p9) target bundleno = 638 (0x27e), region = 32 }
  0x42   : > { %898 = dma.vmem_to_smem (!%p896_p12), %s170_s8, 16, %s1102_s10, [#allocation8]  }
  0x48   : > { %1068 = dma.done.wait (%p1222_p10), [#allocation8], 16  }
  0x49   : > { %1070 = vsyncadd (%p1222_p10), [#allocation8], 4294967280 }
  0x4a   : > { %209 = sfence }
  0x4b   : > { %v1103_v0 = vmov 0.0   ;;  %s1241_s11 = sld [smem:[#allocation4 + %s1089_s17]]  ;;  %s1244_s12 = sshll.u32 %s1089_s17, 4  ;;  %vm1104_vm0 = vmmov 0   ;;  %v1255_v1 = vld [vmem:[%s1438_s4] sm:$0x1]  ;;  %v267_v2 = vlaneseq }
  0x4c   : > { %849 = vmatprep.subr.bf16.mxu0 %v1103_v0  ;;  %s274_s13 = sld [smem:[#allocation6 + %s1244_s12]]  ;;  %s275_s14 = sadd.s32 1, %s1244_s12  ;;  %865 = vmatprep.mubr.msk.bf16.mxu0 %vm1104_vm0, %v1103_v0  ;;  %v1262_v4 = vld [vmem:[%s1438_s4 + $0x1] sm:$0x1]  ;;  %v1271_v11 = vld [vmem:[%s1438_s4 + $0x2] sm:$0x1] }
  0x4d   : > { %s276_s0 = sld [smem:[#allocation6 + %s275_s14]]  ;;  %s277_s1 = sadd.s32 2, %s1244_s12  ;;  %v1273_v12 = vshrl.u32 %v267_v2, 7  ;;  %v1281_v17 = vld [vmem:[%s1438_s4 + $0x3] sm:$0x1] }
  0x4e   : > { %s278_s20 = sld [smem:[#allocation6 + %s277_s1]]  ;;  %s279_s21 = sadd.s32 3, %s1244_s12 }
  0x4f   : > { %s280_s23 = sld [smem:[#allocation6 + %s279_s21]]  ;;  %s281_s25 = sadd.s32 4, %s1244_s12  ;;  %v1287_v23 = vadd.s32 8, %v1273_v12  ;;  %v1292_v29 = vsub.s32 0, %v1273_v12  ;;  %v270_v31 = vcvt.s32.f32 %v1273_v12 }
  0x50   : > { %s282_s28 = sld [smem:[#allocation6 + %s281_s25]]  ;;  %s283_s7 = sadd.s32 5, %s1244_s12 }
  0x51   : > { %s284_s8 = sld [smem:[#allocation6 + %s283_s7]]  ;;  %s285_s9 = sadd.s32 6, %s1244_s12  ;;  %v271_v32 = vcvt.s32.f32 %v1287_v23 }
  0x52   : > { %v289_v3 = vstv %s274_s13  ;;  %s286_s14 = sld [smem:[#allocation6 + %s285_s9]]  ;;  %s287_s1 = sadd.s32 7, %s1244_s12 }
  0x53   : > { %v290_v5 = vmul.f32 %v289_v3, %v1255_v1  ;;  %v301_v6 = vstv %s276_s0  ;;  %s288_s21 = sld [smem:[#allocation6 + %s287_s1]]  ;;  %s812_s3 = sshll.u32 %s1241_s11, 3 }
  0x54   : > { %v291_v7 = vstv %s278_s20  ;;  %v302_v8 = vmul.f32 %v301_v6, %v1255_v1  ;;  %s1284_s20 = scvt.s32.f32 %s812_s3  ;;  %s239_s11 = sld [smem:[#allocation3 + %s1089_s17]] }
  0x55   : > { %v292_v9 = vmul.f32 %v291_v7, %v1262_v4  ;;  %v303_v10 = vstv %s280_s23  ;;  %s240_s23 = sld [smem:[#allocation4 + %s1089_s17]]  ;;  %s1443_s1 = sand.u32 1, %s1081_s15  }
  0x56   : > { %v294_v13 = vstv %s282_s28  ;;  %v304_v14 = vmul.f32 %v303_v10, %v1262_v4  ;;  %v313_v34 = vstv %s1284_s20 }
  0x57   : > { %v293_v15 = vadd.f32 %v292_v9, %v290_v5  ;;  %v295_v16 = vmul.f32 %v294_v13, %v1271_v11  ;;  %v306_v19 = vstv %s284_s8 }
  0x58   : > { %v305_v18 = vadd.f32 %v304_v14, %v302_v8  ;;  %v297_v21 = vstv %s286_s14  ;;  %v307_v22 = vmul.f32 %v306_v19, %v1271_v11  ;;  %s475_s14 = sld [smem:[#allocation5 + %s1089_s17]] }
  0x59   : > { %v296_v20 = vadd.f32 %v295_v16, %v293_v15  ;;  %v298_v24 = vmul.f32 %v297_v21, %v1281_v17  ;;  %v309_v25 = vstv %s288_s21  ;;  %s809_s21 = sshll.u32 %s1443_s1, 3 }
  0x5a   : > { %v308_v26 = vadd.f32 %v307_v22, %v305_v18  ;;  %v310_v27 = vmul.f32 %v309_v25, %v1281_v17  ;;  %p241_p9 = scmp.lt.s32.totalorder %s239_s11, 1  ;;  %s1341_s25 = scalar_lea.vmem [#allocation9], %s809_s21 }
  0x5b   : > { %v299_v28 = vadd.f32 %v298_v24, %v296_v20  ;;  %p243_p10 = scmp.lt.s32.totalorder %s240_s23, 1 }
  0x5c   : > { %v311_v30 = vadd.f32 %v310_v27, %v308_v26  ;;  %s1459_s11 = smov (!%p241_p9, %s239_s11), 1 }
  0x5d   : > { %v814_v33 = vadd.f32 -0.5, %v299_v28  ;;  %s1461_s23 = smov (!%p243_p10, %s240_s23), 1  ;;  %s810_s28 = sshll.u32 %s1459_s11, 1 }
  0x5e   : > { %v815_v35 = vadd.f32 -0.5, %v311_v30  ;;  %s246_s30 = sadd.s32 %s810_s28, %s1461_s23  ;;  %p816_p11 = scmp.le.s32.totalorder %s475_s14, 1 }
  0x5f   : > { %v351_v36 = vrot.slane %v814_v33, %v1292_v29  ;;  %s811_s7 = sshll.u32 %s246_s30, 1  ;;  %s828_s29 = sadd.s32 (!%p816_p11), 8, %s1244_s12  ;;  %vm1106_vm1 = vmmov (!%p816_p11), 0  }
  0x60   : > { %v314_v37 = vsub.f32 %v815_v35, %v313_v34  ;;  %s248_s10 = scalar_lea.vmem %s1439_s5, %s811_s7  ;;  %s483_s3 = sld [smem:[#allocation6 + %s828_s29]] (!%p816_p11) }
  0x61   : > { %v353_v38 = vsub.f32 %v270_v31, %v351_v36  ;;  %v354_v39 = vsub.f32 %v271_v32, %v351_v36  ;;  %s484_s13 = sadd.s32 (!%p816_p11), 1, %s828_s29  ;;  %s486_s11 = sadd.s32 (!%p816_p11), 2, %s828_s29 }
  0x62   : > { %v315_v40 = vsub.f32 0.0, %v314_v37  ;;  %v316_v41 = vsub.f32 1.0, %v314_v37  ;;  %v317_v42 = vsub.f32 2.0, %v314_v37  ;;  %v318_v43 = vsub.f32 3.0, %v314_v37  ;;  %s485_s0 = sld [smem:[#allocation6 + %s484_s13]] (!%p816_p11)  ;;  %s488_s28 = sadd.s32 (!%p816_p11), 3, %s828_s29 }
  0x63   : > { %v355_v44 = vand.u32 2147483647, %v353_v38  ;;  %v356_v45 = vand.u32 2147483647, %v354_v39  ;;  %v319_v46 = vsub.f32 4.0, %v314_v37  ;;  %v320_v47 = vsub.f32 5.0, %v314_v37 }
  0x64   : > { %v323_v48 = vand.u32 2147483647, %v315_v40  ;;  %v324_v49 = vand.u32 2147483647, %v316_v41  ;;  %v325_v50 = vand.u32 2147483647, %v317_v42 }
  0x65   : > { %v357_v51 = vsub.f32 1.0, %v355_v44  ;;  %v358_v52 = vsub.f32 1.0, %v356_v45  ;;  %v326_v53 = vand.u32 2147483647, %v318_v43  ;;  %v327_v54 = vand.u32 2147483647, %v319_v46 }
  0x66   : > { %v331_v55 = vsub.f32 1.0, %v323_v48  ;;  %v332_v56 = vsub.f32 1.0, %v324_v49  ;;  %v333_v57 = vsub.f32 1.0, %v325_v50  ;;  %v328_v5 = vand.u32 2147483647, %v320_v47  ;;  %s487_s23 = sld [smem:[#allocation6 + %s486_s11]] (!%p816_p11) }
  0x67   : > { %v359_v58 = vmax.f32 %v357_v51, 0.0  ;;  %v334_v59 = vsub.f32 1.0, %v326_v53  ;;  %v360_v61 = vmax.f32 %v358_v52, 0.0  ;;  %v335_v3 = vsub.f32 1.0, %v327_v54  ;;  %s489_s30 = sld [smem:[#allocation6 + %s488_s28]] (!%p816_p11)  ;;  %s490_s7 = sadd.s32 (!%p816_p11), 4, %s828_s29 }
  0x68   : > { %v339_v60 = vmax.f32 %v331_v55, 0.0  ;;  %v340_v62 = vmax.f32 %v332_v56, 0.0  ;;  %v341_v63 = vmax.f32 %v333_v57, 0.0  ;;  %v321_v6 = vsub.f32 6.0, %v314_v37  ;;  %s491_s8 = sld [smem:[#allocation6 + %s490_s7]] (!%p816_p11)  ;;  %s492_s9 = sadd.s32 (!%p816_p11), 5, %s828_s29 }
  0x69   : > { %v342_v2 = vmax.f32 %v334_v59, 0.0  ;;  %v1304_v10 = vpack.c.bf16 %v360_v61, %v359_v58  ;;  %v343_v16 = vmax.f32 %v335_v3, 0.0  ;;  %v336_v18 = vsub.f32 1.0, %v328_v5  ;;  %v1334_v58 = vld [vmem:[%s248_s10] sm:$0x3]  ;;  %s493_s10 = sld [smem:[#allocation6 + %s492_s9]] (!%p816_p11) }
  0x6a   : > { %v361_v7 = vpack.c.bf16 %v339_v60, %v339_v60  ;;  %v362_v8 = vpack.c.bf16 %v340_v62, %v340_v62  ;;  %v363_v9 = vpack.c.bf16 %v341_v63, %v341_v63  ;;  %v329_v19 = vand.u32 2147483647, %v321_v6  ;;  %s494_s14 = sadd.s32 (!%p816_p11), 6, %s828_s29  ;;  %s496_s12 = sadd.s32 (!%p816_p11), 7, %s828_s29 }
  0x6b   : > { %v364_v15 = vpack.c.bf16 %v342_v2, %v342_v2  ;;  %v322_v24 = vsub.f32 7.0, %v314_v37  ;;  %v365_v27 = vpack.c.bf16 %v343_v16, %v343_v16  ;;  %v344_v28 = vmax.f32 %v336_v18, 0.0  ;;  %s495_s21 = sld [smem:[#allocation6 + %s494_s14]] (!%p816_p11) }
  0x6c   : > { %v371_v13 = vpack.i.b16 %v361_v7, %v361_v7  ;;  %v378_v14 = vpack.i.b16 %v362_v8, %v362_v8  ;;  %v385_v22 = vpack.i.b16 %v363_v9, %v363_v9  ;;  %v337_v35 = vsub.f32 1.0, %v329_v19  ;;  %s497_s1 = sld [smem:[#allocation6 + %s496_s12]] (!%p816_p11) }
  0x6d   : > { %v392_v26 = vpack.i.b16 %v364_v15, %v364_v15  ;;  %v330_v36 = vand.u32 2147483647, %v322_v24  ;;  %v399_v38 = vpack.i.b16 %v365_v27, %v365_v27  ;;  %v366_v39 = vpack.c.bf16 %v344_v28, %v344_v28 }
  0x6e   : > { %v376_v20 = vrot.slane %v371_v13, %v1292_v29  ;;  %v383_v21 = vrot.slane %v378_v14, %v1292_v29  ;;  %v390_v33 = vrot.slane %v385_v22, %v1292_v29  ;;  %v345_v41 = vmax.f32 %v337_v35, 0.0 }
  0x6f   : > { %v397_v40 = vrot.slane %v392_v26, %v1292_v29  ;;  %v338_v42 = vsub.f32 1.0, %v330_v36  ;;  %v406_v43 = vpack.i.b16 %v366_v39, %v366_v39  ;;  %v404_v45 = vrot.slane %v399_v38, %v1292_v29 }
  0x70   : > { %v426_v25 = vmul.bf16 %v376_v20, %v1304_v10  ;;  %v427_v30 = vmul.bf16 %v383_v21, %v1304_v10  ;;  %v428_v37 = vmul.bf16 %v390_v33, %v1304_v10  ;;  %v367_v46 = vpack.c.bf16 %v345_v41, %v345_v41 }
  0x71   : > { %v429_v44 = vmul.bf16 %v397_v40, %v1304_v10  ;;  %v346_v47 = vmax.f32 %v338_v42, 0.0  ;;  %v430_v48 = vmul.bf16 %v404_v45, %v1304_v10  ;;  %v411_v49 = vrot.slane %v406_v43, %v1292_v29 }
  0x72   : > { %850 = vmatpush3.bf16.msra.mxu0 %v426_v25  ;;  %v413_v50 = vpack.i.b16 %v367_v46, %v367_v46  ;;  %v1105_v62 = vmov (!%p816_p11), 0.0   ;;  %v498_v63 = vstv (!%p816_p11), %s483_s3  ;;  %v510_v3 = vstv (!%p816_p11), %s485_s0 }
  0x73   : > { %851 = vmatprep.subr.bf16.mxu0 %v1103_v0  ;;  %v368_v51 = vpack.c.bf16 %v346_v47, %v346_v47  ;;  %v431_v52 = vmul.bf16 %v411_v49, %v1304_v10  ;;  %v499_v2 = vmul.f32 (!%p816_p11), %v498_v63, %v1255_v1  ;;  %v500_v5 = vstv (!%p816_p11), %s487_s23 }
  0x74   : > { %v418_v53 = vrot.slane %v413_v50, %v1292_v29  ;;  %v511_v6 = vmul.f32 (!%p816_p11), %v510_v3, %v1255_v1  ;;  %v501_v7 = vmul.f32 (!%p816_p11), %v500_v5, %v1262_v4  ;;  %v512_v8 = vstv (!%p816_p11), %s489_s30 }
  0x75   : > { %v420_v54 = vpack.i.b16 %v368_v51, %v368_v51  ;;  %v503_v9 = vstv (!%p816_p11), %s491_s8  ;;  %v515_v15 = vstv (!%p816_p11), %s493_s10  ;;  %v506_v16 = vstv (!%p816_p11), %s495_s21 }
  0x76   : > { %852 = vmatpush3.bf16.msra.mxu0 %v427_v30  ;;  %v432_v55 = vmul.bf16 %v418_v53, %v1304_v10  ;;  %v502_v13 = vadd.f32 (!%p816_p11), %v501_v7, %v499_v2  ;;  %v504_v14 = vmul.f32 (!%p816_p11), %v503_v9, %v1271_v11  ;;  %v516_v19 = vmul.f32 (!%p816_p11), %v515_v15, %v1271_v11 }
  0x77   : > { %853 = vmatprep.subr.bf16.mxu0 %v1103_v0  ;;  %v425_v56 = vrot.slane %v420_v54, %v1292_v29  ;;  %v507_v21 = vmul.f32 (!%p816_p11), %v506_v16, %v1281_v17  ;;  %v518_v22 = vstv (!%p816_p11), %s497_s1 }
  0x78   : > { %v505_v20 = vadd.f32 (!%p816_p11), %v504_v14, %v502_v13  ;;  %v519_v24 = vmul.f32 (!%p816_p11), %v518_v22, %v1281_v17 }
  0x79   : > { %v433_v57 = vmul.bf16 %v425_v56, %v1304_v10  ;;  %v513_v10 = vmul.f32 (!%p816_p11), %v512_v8, %v1262_v4 }
  0x7a   : > { %854 = vmatpush3.bf16.msra.mxu0 %v428_v37  ;;  %v508_v25 = vadd.f32 (!%p816_p11), %v507_v21, %v505_v20 }
  0x7b   : > { %855 = vmatprep.subr.bf16.mxu0 %v1103_v0  ;;  %v514_v18 = vadd.f32 (!%p816_p11), %v513_v10, %v511_v6 }
  0x7c   : > { %v819_v27 = vadd.f32 (!%p816_p11), -0.5, %v508_v25 }
  0x7d   : > { %v517_v1 = vadd.f32 (!%p816_p11), %v516_v19, %v514_v18 }
  0x7e   : > { %856 = vmatpush3.bf16.msra.mxu0 %v429_v44  ;;  %v559_v28 = vrot.slane (!%p816_p11), %v819_v27, %v1292_v29 }
  0x7f   : > { %857 = vmatprep.subr.bf16.mxu0 %v1103_v0  ;;  %v520_v26 = vadd.f32 (!%p816_p11), %v519_v24, %v517_v1 }
  0x80   : > { %v561_v33 = vsub.f32 (!%p816_p11), %v270_v31, %v559_v28  ;;  %v562_v11 = vsub.f32 (!%p816_p11), %v271_v32, %v559_v28 }
  0x81   : > { %v820_v4 = vadd.f32 (!%p816_p11), -0.5, %v520_v26 }
  0x82   : > { %858 = vmatpush3.bf16.msra.mxu0 %v430_v48  ;;  %v563_v37 = vand.u32 (!%p816_p11), 2147483647, %v561_v33  ;;  %v564_v17 = vand.u32 (!%p816_p11), 2147483647, %v562_v11 }
  0x83   : > { %859 = vmatprep.subr.bf16.mxu0 %v1103_v0  ;;  %v522_v30 = vsub.f32 (!%p816_p11), %v820_v4, %v313_v34 }
  0x84   : > { %v565_v45 = vsub.f32 (!%p816_p11), 1.0, %v563_v37  ;;  %v566_v46 = vsub.f32 (!%p816_p11), 1.0, %v564_v17 }
  0x85   : > { %v523_v35 = vsub.f32 (!%p816_p11), 0.0, %v522_v30  ;;  %v524_v36 = vsub.f32 (!%p816_p11), 1.0, %v522_v30  ;;  %v525_v38 = vsub.f32 (!%p816_p11), 2.0, %v522_v30  ;;  %v526_v39 = vsub.f32 (!%p816_p11), 3.0, %v522_v30 }
  0x86   : > { %860 = vmatpush3.bf16.msra.mxu0 %v431_v52  ;;  %v527_v40 = vsub.f32 (!%p816_p11), 4.0, %v522_v30  ;;  %v528_v41 = vsub.f32 (!%p816_p11), 5.0, %v522_v30  ;;  %v567_v23 = vmax.f32 (!%p816_p11), %v565_v45, 0.0  ;;  %v568_v50 = vmax.f32 (!%p816_p11), %v566_v46, 0.0 }
  0x87   : > { %861 = vmatprep.subr.bf16.mxu0 %v1103_v0  ;;  %v531_v42 = vand.u32 (!%p816_p11), 2147483647, %v523_v35  ;;  %v532_v43 = vand.u32 (!%p816_p11), 2147483647, %v524_v36  ;;  %v533_v44 = vand.u32 (!%p816_p11), 2147483647, %v525_v38 }
  0x88   : > { %v534_v34 = vand.u32 (!%p816_p11), 2147483647, %v526_v39  ;;  %v535_v47 = vand.u32 (!%p816_p11), 2147483647, %v527_v40  ;;  %v529_v56 = vsub.f32 (!%p816_p11), 6.0, %v522_v30  ;;  %v530_v10 = vsub.f32 (!%p816_p11), 7.0, %v522_v30 }
  0x89   : > { %v539_v12 = vsub.f32 (!%p816_p11), 1.0, %v531_v42  ;;  %v540_v31 = vsub.f32 (!%p816_p11), 1.0, %v532_v43  ;;  %v541_v48 = vsub.f32 (!%p816_p11), 1.0, %v533_v44 }
  0x8a   : > { %862 = vmatpush3.bf16.msra.mxu0 %v432_v55  ;;  %v542_v32 = vsub.f32 (!%p816_p11), 1.0, %v534_v34  ;;  %v543_v54 = vsub.f32 (!%p816_p11), 1.0, %v535_v47  ;;  %v536_v55 = vand.u32 (!%p816_p11), 2147483647, %v528_v41  ;;  %v537_v6 = vand.u32 (!%p816_p11), 2147483647, %v529_v56 }
  0x8b   : > { %863 = vmatprep.subr.bf16.mxu0 %v1103_v0  ;;  %v547_v49 = vmax.f32 (!%p816_p11), %v539_v12, 0.0  ;;  %v548_v51 = vmax.f32 (!%p816_p11), %v540_v31, 0.0  ;;  %v549_v52 = vmax.f32 (!%p816_p11), %v541_v48, 0.0  ;;  %v538_v21 = vand.u32 (!%p816_p11), 2147483647, %v530_v10 }
  0x8c   : > { %v550_v53 = vmax.f32 (!%p816_p11), %v542_v32, 0.0  ;;  %v551_v3 = vmax.f32 (!%p816_p11), %v543_v54, 0.0  ;;  %v544_v5 = vsub.f32 (!%p816_p11), 1.0, %v536_v55  ;;  %v545_v20 = vsub.f32 (!%p816_p11), 1.0, %v537_v6 }
  0x8d   : > { %v546_v27 = vsub.f32 (!%p816_p11), 1.0, %v538_v21 }
  0x8e   : > { %864 = vmatpush3.bf16.msra.mxu0 %v433_v57  ;;  %v569_v57 = vpack.c.bf16 (!%p816_p11), %v547_v49, %v547_v49  ;;  %v572_v2 = vpack.c.bf16 (!%p816_p11), %v550_v53, %v550_v53  ;;  %v573_v15 = vpack.c.bf16 (!%p816_p11), %v551_v3, %v551_v3  ;;  %v552_v16 = vmax.f32 (!%p816_p11), %v544_v5, 0.0 }
  0x8f   : > { %869 = vmatprep.subr.bf16.mxu0 (!%p816_p11), %v1105_v62  ;;  %v553_v26 = vmax.f32 (!%p816_p11), %v545_v20, 0.0  ;;  %v554_v11 = vmax.f32 (!%p816_p11), %v546_v27, 0.0 }
  0x90   : > { %v600_v14 = vpack.i.b16 (!%p816_p11), %v572_v2, %v572_v2  ;;  %v607_v22 = vpack.i.b16 (!%p816_p11), %v573_v15, %v573_v15  ;;  %v574_v1 = vpack.c.bf16 (!%p816_p11), %v552_v16, %v552_v16 }
  0x91   : > { %866 = vmatmul.mubr.bf16.vlgmr.msra.gmra.mrb[0].mxu0 %v1334_v58  ;;  %v575_v33 = vpack.c.bf16 (!%p816_p11), %v553_v26, %v553_v26  ;;  %v576_v39 = vpack.c.bf16 (!%p816_p11), %v554_v11, %v554_v11 }
  0x92   : > { %885 = vmatprep.mubr.msk.bf16.mxu0 (!%p816_p11), %vm1106_vm1, %v1105_v62  ;;  %v605_v25 = vrot.slane (!%p816_p11), %v600_v14, %v1292_v29  ;;  %v614_v4 = vpack.i.b16 (!%p816_p11), %v574_v1, %v574_v1  ;;  %v612_v30 = vrot.slane (!%p816_p11), %v607_v22, %v1292_v29 }
  0x93   : > { %v621_v38 = vpack.i.b16 (!%p816_p11), %v575_v33, %v575_v33  ;;  %v628_v40 = vpack.i.b16 (!%p816_p11), %v576_v39, %v576_v39 }
  0x94   : > { %v619_v36 = vrot.slane (!%p816_p11), %v614_v4, %v1292_v29 }
  0x95   : > { %v626_v17 = vrot.slane (!%p816_p11), %v621_v38, %v1292_v29  ;;  %v633_v42 = vrot.slane (!%p816_p11), %v628_v40, %v1292_v29 }
 0x161   : > { %479 = sbr.rel (%p816_p11) target bundleno = 612 (0x264), region = 40 }
 0x164   : > { %v468_v59 = vpop.f32.mrb[0].mxu0 }
 0x165   : > { %474 = vst [vmem:[%s1341_s25] sm:$0xf] %v468_v59  ;;  %v867_v60 = vpop.f32.mrb[1].mxu0  ;;  %v570_v59 = vpack.c.bf16 (!%p816_p11), %v548_v51, %v548_v51 }
 0x166   : > { %v471_v0 = vpop.f32.mrb[2].mxu0  ;;  %v571_v60 = vpack.c.bf16 (!%p816_p11), %v549_v52, %v549_v52 }
 0x167   : > { %v868_v61 = vpop.f32.mrb[3].mxu0  ;;  %v577_v0 = vpack.c.bf16 (!%p816_p11), %v568_v50, %v567_v23  ;;  %v586_v63 = vpack.i.b16 (!%p816_p11), %v570_v59, %v570_v59 }
 0x168   : > { %v579_v61 = vpack.i.b16 %v569_v57, %v569_v57  ;;  %v593_v9 = vpack.i.b16 %v571_v60, %v571_v60 }
 0x169   : > { %v591_v8 = vrot.slane %v586_v63, %v1292_v29  ;;  %v637_v28 = vmul.bf16 %v605_v25, %v577_v0  ;;  %v638_v35 = vmul.bf16 %v612_v30, %v577_v0  ;;  %v639_v37 = vmul.bf16 %v619_v36, %v577_v0 }
 0x16a   : > { %v584_v7 = vrot.slane %v579_v61, %v1292_v29  ;;  %v598_v19 = vrot.slane %v593_v9, %v1292_v29  ;;  %v640_v41 = vmul.bf16 %v626_v17, %v577_v0  ;;  %v641_v43 = vmul.bf16 %v633_v42, %v577_v0 }
 0x16b   : > { %v635_v18 = vmul.bf16 %v591_v8, %v577_v0 }
 0x16c   : > { %v634_v13 = vmul.bf16 %v584_v7, %v577_v0  ;;  %v636_v24 = vmul.bf16 %v598_v19, %v577_v0 }
 0x16e   : > { %870 = vmatpush3.bf16.msra.mxu0 %v634_v13 }
 0x16f   : > { %871 = vmatprep.subr.bf16.mxu0 %v1105_v62 }
 0x172   : > { %872 = vmatpush3.bf16.msra.mxu0 %v635_v18 }
 0x173   : > { %873 = vmatprep.subr.bf16.mxu0 %v1105_v62 }
 0x176   : > { %874 = vmatpush3.bf16.msra.mxu0 %v636_v24 }
 0x177   : > { %875 = vmatprep.subr.bf16.mxu0 %v1105_v62 }
 0x17a   : > { %876 = vmatpush3.bf16.msra.mxu0 %v637_v28 }
 0x17b   : > { %877 = vmatprep.subr.bf16.mxu0 %v1105_v62 }
 0x17e   : > { %878 = vmatpush3.bf16.msra.mxu0 %v638_v35 }
 0x17f   : > { %879 = vmatprep.subr.bf16.mxu0 %v1105_v62 }
 0x182   : > { %880 = vmatpush3.bf16.msra.mxu0 %v639_v37 }
 0x183   : > { %881 = vmatprep.subr.bf16.mxu0 %v1105_v62 }
 0x186   : > { %882 = vmatpush3.bf16.msra.mxu0 %v640_v41 }
 0x187   : > { %883 = vmatprep.subr.bf16.mxu0 %v1105_v62 }
 0x18a   : > { %884 = vmatpush3.bf16.msra.mxu0 %v641_v43 }
 0x18d   : > { %886 = vmatmul.mubr.bf16.vlgmr.msra.gmra.mrb[0].mxu0 %v1334_v58 }
 0x260   : > { %v676_v44 = vpop.f32.mrb[0].mxu0 }
 0x261   : > { %821 = vst [vmem:[%s1341_s25 + $0x4] sm:$0xf] %v676_v44  ;;  %v887_v45 = vpop.f32.mrb[1].mxu0 }
 0x262   : > { %v679_v46 = vpop.f32.mrb[2].mxu0 }
 0x263   : > { %v888_v34 = vpop.f32.mrb[3].mxu0 }
 0x264 PF: > { %s829_s20 = sshll.u32 %s1089_s17, 7  ;;  %s699_s13 = sshll.u32 %s1341_s25, 4  ;;  %s1386_s13 = int_to_ptr.vmem [resolvable:$true] %s699_s13 }
 0x265   : > { %s1383_s3 = scalar_lea.hbm %s1440_s6, %s829_s20  ;;  %s1450_s0 = sand.u32 1, %s1081_s15  }
 0x266   : > { %s1390_s11 = scalar_lea.sflag [#allocation7], %s1450_s0  ;;  %s1013_s23 = scalar_lea.vmem %s1386_s13, 128 }
 0x267   : > { %p1014_p12 = scmp.ne.s32.totalorder %s1386_s13, %s1013_s23  ;;  %s1107_s17 = smov [#allocation9]  }
 0x268   : > { %s1017_s28 = sshll.u32 %s1107_s17, 4  ;;  %s1018_s28 = int_to_ptr.vmem [resolvable:$false] %s1017_s28 }
 0x269   : > { %p1015_p13 = pnand %p1014_p12, %p1203_p3  ;;  %s1019_s30 = scalar_lea.vmem %s1018_s28, 256 }
 0x26a   : > { %p1020_p1 = scmp.lt.s32.totalorder %s1386_s13, %s1018_s28  ;;  %p1021_p2 = scmp.lt.s32.totalorder %s1019_s30, %s1013_s23 }
 0x26b   : > { %p1016_p0 = pneg %p1015_p13 }
 0x26c   : > { %p1022_p4 = por %p1021_p2, %p1020_p1 }
 0x26e   : > { %p1023_p5 = pnand %p1022_p4, %p1016_p0 }
 0x270   : > { %1026 = shalt.err (!%p1023_p5)
}
 0x271   : > { %s1027_s25 = scalar_lea.hbm %s1383_s3, 128  ;;  %s1031_s9 = scalar_lea.hbm %s1440_s6, 256 }
 0x272   : > { %p1028_p6 = scmp.ne.s32.totalorder %s1383_s3, %s1027_s25  ;;  %p1032_p10 = scmp.lt.u32.totalorder %s1383_s3, %s1440_s6 }
 0x273   : > { %p1033_p11 = scmp.lt.u32.totalorder %s1031_s9, %s1027_s25  ;;  %p1035_p13 = scmp.lt.u32.totalorder %s1027_s25, %s1383_s3 }
 0x274   : > { %p1029_p8 = pnand %p1028_p6, %p1203_p3 }
 0x275   : > { %p1034_p12 = por %p1033_p11, %p1032_p10 }
 0x276   : > { %p1030_p9 = pneg %p1029_p8 }
 0x277   : > { %p1036_p0 = por %p1035_p13, %p1034_p12 }
 0x279   : > { %p1037_p1 = pnand %p1036_p0, %p1030_p9 }
 0x27b   : > { %1040 = shalt.err (!%p1037_p1)
}
 0x27c   : > { %s1108_s21 = smov 64   ;;  %s1109_s12 = smov 4  }
 0x27d   : > { %893 = dma.vmem_to_hbm [thread:$0]  (%p1203_p3), %s1386_s13, 128, %s1383_s3, %s1390_s11, %s1108_s21, %s1108_s21, %s1109_s12  }
 0x27e PF: > { %p905_p2 = scmp.ge.s32.totalorder %s1097_s19, 2  ;;  %s714_s20 = sand.u32 1, %s1077_s2  }
 0x27f   : > { %s715_s1 = scalar_lea.sflag [#allocation7], %s714_s20 }
 0x280   : > { %p900_p4 = pnand %p905_p2, %p1210_p7 }
 0x282   : > { %1072 = dma.done.wait (!%p900_p4), %s715_s1, 128  }
 0x283   : > { %1074 = vsyncadd (!%p900_p4), %s715_s1, 4294967168  ;;  %s32_s19 = sadd.s32 1, %s1097_s19   ;;  %s1451_s2 = smov %s1081_s15 }
 0x284   : > { %p29_p5 = scmp.ge.s32.totalorder %s32_s19, 4   ;;  %s1452_s15 = smov %s1085_s16 }
 0x285   : > { %s1453_s16 = smov %s1216_s27  ;;  %s1454_s17 = smov %s1093_s18 }
 0x286   : > { %s1455_s18 = smov %s1457_s22  ;;  %31 = sbr.rel (!%p29_p5) target bundleno = 38 (0x26), region = 80 }
 0x28d   :  { %720 = vsyncpa [#allocation7], 1 }
 0x28e   :  { %722 = vsyncpa [#allocation7 + $0x1], 1 }
 0x28f   :  { %723 = vsyncpa [#allocation8], 1 }
 0x290   :  { %725 = vsyncpa [#allocation8 + $0x1], 1 }

</bundles_post_ra>
